<compile_context>
chip_gen: v7x
topology: tpu7x:2x2x1
jax: 0.10.0
libtpu: 0.0.40
codegen_flags: <defaults>
</compile_context>

<pallas_src>
import functools

import jax
import jax.numpy as jnp
from jax.experimental import pallas as pl
from jax.experimental.pallas import tpu as pltpu


# ---------------------------------------------------------------------------
# Kernels
# ---------------------------------------------------------------------------

def _residual_linear_kernel_f32out(x_mm_ref, x_res_ref, wt_ref, b_ref, o_ref):
    """f32 output: accumulate directly into the resident output block.

    x_mm_ref : (tm, tk) bf16  rows of x, K-slice (matmul operand)
    x_res_ref: (tm, tn) f32   rows of x, N-slice (residual operand)
    wt_ref   : (tk, tn) bf16  W^T tile
    b_ref    : (1,  tn) f32   bias tile
    o_ref    : (tm, tn) f32   output tile (resident across k -> accumulator)
    """
    k = pl.program_id(2)

    @pl.when(k == 0)
    def _():
        o_ref[...] = jnp.zeros_like(o_ref)

    o_ref[...] += jnp.dot(x_mm_ref[...], wt_ref[...],
                          preferred_element_type=jnp.float32)

    @pl.when(k == pl.num_programs(2) - 1)
    def _():
        y = jnp.maximum(o_ref[...] + b_ref[...], 0.0)   # bias + ReLU in f32
        o_ref[...] = x_res_ref[...] + y                  # residual add


def _residual_linear_kernel_acc(x_mm_ref, x_res_ref, wt_ref, b_ref, o_ref, acc_ref):
    """Non-f32 output (e.g. bf16): keep an f32 VMEM accumulator."""
    k = pl.program_id(2)

    @pl.when(k == 0)
    def _():
        acc_ref[...] = jnp.zeros_like(acc_ref)

    acc_ref[...] += jnp.dot(x_mm_ref[...], wt_ref[...],
                            preferred_element_type=jnp.float32)

    @pl.when(k == pl.num_programs(2) - 1)
    def _():
        y = jnp.maximum(acc_ref[...] + b_ref[...], 0.0)
        o_ref[...] = (x_res_ref[...].astype(jnp.float32) + y).astype(o_ref.dtype)


# ---------------------------------------------------------------------------
# Parameter preparation (one-time, outside the per-call hot path)
# ---------------------------------------------------------------------------

def _round_up(a, b):
    return -(-a // b) * b


def prepare_params(weight, bias):
    """weight: (d_out, d_in) nn.Linear layout -> padded (dp, dp) W^T in bf16.

    Both feature dims are zero-padded to a multiple of 128 so the kernel can
    always use lane-dense 128-multiple tiles (never a full (d,d) VMEM block).
    Padded weight columns / bias entries are zero, so padded output columns
    are exactly zero and get sliced off.
    """
    w = jnp.asarray(weight)
    b = jnp.asarray(bias)
    d_out, d_in = w.shape
    dp_in = _round_up(d_in, 128)
    dp_out = _round_up(d_out, 128)
    wt = jnp.pad(w.T, ((0, dp_in - d_in), (0, dp_out - d_out))).astype(jnp.bfloat16)
    b2 = jnp.pad(b.astype(jnp.float32), (0, dp_out - d_out)).reshape(1, -1)
    return wt, b2


def _pick_feature_tile(dp, t):
    """Largest multiple of 128 that divides dp (itself a multiple of 128) and is <= t."""
    best = 128
    cand = 128
    limit = min(t, dp)
    while cand <= limit:
        if dp % cand == 0:
            best = cand
        cand += 128
    return best


# ---------------------------------------------------------------------------
# Host wrapper
# ---------------------------------------------------------------------------

@functools.partial(jax.jit, static_argnames=("tm", "tn", "tk"))
def residual_linear(x, wt, bias2d, *, tm=512, tn=1024, tk=512):
    """out = x + relu(x @ W^T + b).  wt/bias2d come from prepare_params()."""
    d = x.shape[-1]
    dp = wt.shape[0]
    lead = x.shape[:-1]
    x2 = x.reshape(-1, d)
    M = x2.shape[0]

    xb = jnp.dtype(x.dtype).itemsize
    ob = xb
    use_scratch = jnp.dtype(x.dtype) != jnp.dtype(jnp.float32)

    # Row tile: ceil-split M to minimize padding waste; multiple of 16 for the
    # bf16 matmul operand's sublane packing.
    num_m = max(1, -(-M // tm))
    tm_e = max(16, _round_up(-(-M // num_m), 16))
    Mp = _round_up(M, tm_e)

    # Lane-dense feature tiles (always multiples of 128 dividing the padded d).
    tn_e = _pick_feature_tile(dp, tn)
    tk_e = _pick_feature_tile(dp, tk)

    # v7x megacore: make sure the parallel grid has >= 2 blocks when possible.
    if (Mp // tm_e) * (dp // tn_e) < 2 and dp >= 256:
        tn_e = _pick_feature_tile(dp, max(128, tn_e // 2))

    # ---- VMEM budget check (generation-aware), shrink tiles if needed ----
    def _vmem_need(tm_, tn_, tk_):
        need = 0
        need += 2 * tm_ * tk_ * 2           # x_mm (bf16), double-buffered
        need += 2 * tm_ * tn_ * xb          # x_res
        need += 2 * tk_ * tn_ * 2           # W^T (bf16)
        need += 2 * 8 * tn_ * 4             # bias (sublane-padded)
        need += 2 * tm_ * tn_ * ob          # output
        if use_scratch:
            need += tm_ * tn_ * 4           # f32 accumulator scratch
        return need

    try:
        cap = int(pltpu.get_tpu_info().vmem_capacity_bytes)
    except Exception:
        cap = 64 * 1024 * 1024              # conservative (v7x per-TC)
    budget = int(cap * 0.6)
    while _vmem_need(tm_e, tn_e, tk_e) > budget:
        if tn_e >= max(tm_e, tk_e) and tn_e > 128:
            tn_e = _pick_feature_tile(dp, tn_e // 2)
        elif tk_e >= tm_e and tk_e > 128:
            tk_e = _pick_feature_tile(dp, tk_e // 2)
        elif tm_e > 16:
            tm_e = max(16, _round_up(tm_e // 2, 16))
            Mp = _round_up(M, tm_e)
        else:
            break

    # ---- Pad rows / feature dim; stage matmul operand as bf16 once ----
    pad_m = Mp - M
    pad_d = dp - d
    if pad_m or pad_d:
        x2 = jnp.pad(x2, ((0, pad_m), (0, pad_d)))
    x_mm = x2.astype(jnp.bfloat16)   # matmul stream: bf16 (half the HBM bytes)
    x_res = x2                       # residual stream: original dtype

    grid_m, grid_n, grid_k = Mp // tm_e, dp // tn_e, dp // tk_e
    grid = (grid_m, grid_n, grid_k)

    # HBM traffic including per-grid re-read factors.
    cost = pl.CostEstimate(
        flops=2 * Mp * dp * dp,
        bytes_accessed=(grid_n * Mp * dp * 2      # x_mm re-read per N tile
                        + Mp * dp * xb            # x_res (once per (i, j))
                        + grid_m * dp * dp * 2    # W^T re-read per M tile
                        + grid_m * dp * 4         # bias
                        + Mp * dp * ob),          # output writeback
        transcendentals=0,
    )

    need = _vmem_need(tm_e, tn_e, tk_e)
    vmem_limit = int(min(max(need + (16 << 20), 32 << 20),
                         max(cap - (8 << 20), 32 << 20)))

    in_specs = [
        pl.BlockSpec((tm_e, tk_e), lambda i, j, k: (i, k)),   # x (matmul, bf16)
        pl.BlockSpec((tm_e, tn_e), lambda i, j, k: (i, j)),   # x (residual)
        pl.BlockSpec((tk_e, tn_e), lambda i, j, k: (k, j)),   # W^T tile
        pl.BlockSpec((1, tn_e), lambda i, j, k: (0, j)),      # bias tile
    ]
    out_spec = pl.BlockSpec((tm_e, tn_e), lambda i, j, k: (i, j))

    common = dict(
        out_shape=jax.ShapeDtypeStruct((Mp, dp), x.dtype),
        compiler_params=pltpu.CompilerParams(
            dimension_semantics=("parallel", "parallel", "arbitrary"),
            vmem_limit_bytes=vmem_limit,
        ),
        cost_estimate=cost,
    )

    if use_scratch:
        out = pl.pallas_call(
            _residual_linear_kernel_acc,
            grid_spec=pltpu.PrefetchScalarGridSpec(
                num_scalar_prefetch=0,
                grid=grid,
                in_specs=in_specs,
                out_specs=out_spec,
                scratch_shapes=[pltpu.VMEM((tm_e, tn_e), jnp.float32)],
            ),
            **common,
        )(x_mm, x_res, wt, bias2d)
    else:
        # f32 output: accumulate directly into the resident output block.
        out = pl.pallas_call(
            _residual_linear_kernel_f32out,
            grid_spec=pltpu.PrefetchScalarGridSpec(
                num_scalar_prefetch=0,
                grid=grid,
                in_specs=in_specs,
                out_specs=out_spec,
            ),
            **common,
        )(x_mm, x_res, wt, bias2d)

    out = out[:M, :d]
    return out.reshape(*lead, d)


# ---------------------------------------------------------------------------
# Demo / correctness check
# ---------------------------------------------------------------------------

if __name__ == "__main__":
    d_int = 32
    batch, seq = 2, 8   # flattened -> 16 rows

    key = jax.random.PRNGKey(0)
    kx, kw, kb = jax.random.split(key, 3)

    # Deterministic init matching nn.Linear's uniform(-1/sqrt(d), 1/sqrt(d))
    bound = 1.0 / jnp.sqrt(d_int)
    weight = jax.random.uniform(kw, (d_int, d_int), jnp.float32, -bound, bound)
    bias = jax.random.uniform(kb, (d_int,), jnp.float32, -bound, bound)
    x = jax.random.normal(kx, (batch, seq, d_int), jnp.float32)

    # One-time layout/dtype/padding preparation (outside the hot path).
    wt, b2 = prepare_params(weight, bias)

    out = residual_linear(x, wt, b2)
    out = jax.block_until_ready(out)
    assert out.shape == x.shape

    # Reference with the same bf16 matmul operands (matches kernel numerics).
    x2 = x.reshape(-1, d_int)
    y_ref = jnp.dot(x2.astype(jnp.bfloat16), weight.T.astype(jnp.bfloat16),
                    preferred_element_type=jnp.float32)
    ref = x + jnp.maximum(y_ref.reshape(x.shape) + bias, 0.0)
    assert jnp.allclose(out, ref, atol=1e-4, rtol=1e-4)

    # Loose check against the pure-f32 PyTorch semantics (bf16 matmul rounding).
    ref_f32 = x + jnp.maximum(x @ weight.T + bias, 0.0)
    assert jnp.allclose(out, ref_f32, atol=3e-2, rtol=3e-2)

    print("KERNEL_OK")
</pallas_src>

<mosaic_0001>
module attributes {stable_mosaic.version = 11 : i64} {
  func.func @_residual_linear_kernel_f32out(%arg0: i32, %arg1: i32, %arg2: i32, %arg3: memref<16x128xbf16, #tpu.memory_space<vmem>>, %arg4: memref<16x128xf32, #tpu.memory_space<vmem>>, %arg5: memref<128x128xbf16, #tpu.memory_space<vmem>>, %arg6: memref<1x128xf32, #tpu.memory_space<vmem>>, %arg7: memref<16x128xf32, #tpu.memory_space<vmem>>) attributes {dimension_semantics = [#tpu.dimension_semantics<parallel>, #tpu.dimension_semantics<parallel>, #tpu.dimension_semantics<arbitrary>], iteration_bounds = array<i64: 1, 1, 1>, scalar_prefetch = 0 : i64, scratch_operands = 0 : i64, tpu.core_type = #tpu.core_type<tc>, window_params = [{transform_indices = @transform_0, window_bounds = array<i64: 16, 128>}, {transform_indices = @transform_1, window_bounds = array<i64: 16, 128>}, {transform_indices = @transform_2, window_bounds = array<i64: 128, 128>}, {transform_indices = @transform_3, window_bounds = array<i64: 1, 128>}, {transform_indices = @transform_4, window_bounds = array<i64: 16, 128>}]} {
    %c0_i32 = arith.constant 0 : i32
    %0 = arith.cmpi eq, %arg2, %c0_i32 : i32
    %1 = arith.extui %0 : i1 to i32
    %c0_i32_0 = arith.constant 0 : i32
    %2 = arith.cmpi ne, %1, %c0_i32_0 : i32
    scf.if %2 {
      %cst_10 = arith.constant 0.000000e+00 : f32
      %12 = vector.broadcast %cst_10 : f32 to vector<16x128xf32>
      %c0_11 = arith.constant 0 : index
      %c0_12 = arith.constant 0 : index
      %13 = vector.load %arg7[%c0_11, %c0_12] : memref<16x128xf32, #tpu.memory_space<vmem>>, vector<16x128xf32>
      tpu.vector_store %arg7[%c0_11, %c0_12], %12 {strides = array<i32>} : memref<16x128xf32, #tpu.memory_space<vmem>>, vector<16x128xf32>,
    } else {
    }
    %c0 = arith.constant 0 : index
    %c0_1 = arith.constant 0 : index
    %3 = vector.load %arg7[%c0, %c0_1] : memref<16x128xf32, #tpu.memory_space<vmem>>, vector<16x128xf32>
    %c0_2 = arith.constant 0 : index
    %c0_3 = arith.constant 0 : index
    %4 = vector.load %arg3[%c0_2, %c0_3] : memref<16x128xbf16, #tpu.memory_space<vmem>>, vector<16x128xbf16>
    %c0_4 = arith.constant 0 : index
    %c0_5 = arith.constant 0 : index
    %5 = vector.load %arg5[%c0_4, %c0_5] : memref<128x128xbf16, #tpu.memory_space<vmem>>, vector<128x128xbf16>
    %cst = arith.constant dense<0.000000e+00> : vector<16x128xf32>
    %6 = tpu.matmul %4, %5, %cst {dimension_numbers = #tpu.dot_dimension_numbers<[1], [0], [0], [1], [0, 0, 1, 1], [], []>} : vector<16x128xbf16>, vector<128x128xbf16>, vector<16x128xf32> -> vector<16x128xf32>
    %7 = arith.addf %3, %6 : vector<16x128xf32>
    %c0_6 = arith.constant 0 : index
    %c0_7 = arith.constant 0 : index
    %8 = vector.load %arg7[%c0_6, %c0_7] : memref<16x128xf32, #tpu.memory_space<vmem>>, vector<16x128xf32>
    tpu.vector_store %arg7[%c0_6, %c0_7], %7 {strides = array<i32>} : memref<16x128xf32, #tpu.memory_space<vmem>>, vector<16x128xf32>,
    %c0_i32_8 = arith.constant 0 : i32
    %9 = arith.cmpi eq, %arg2, %c0_i32_8 : i32
    %10 = arith.extui %9 : i1 to i32
    %c0_i32_9 = arith.constant 0 : i32
    %11 = arith.cmpi ne, %10, %c0_i32_9 : i32
    scf.if %11 {
      %c0_10 = arith.constant 0 : index
      %c0_11 = arith.constant 0 : index
      %12 = vector.load %arg7[%c0_10, %c0_11] : memref<16x128xf32, #tpu.memory_space<vmem>>, vector<16x128xf32>
      %c0_12 = arith.constant 0 : index
      %c0_13 = arith.constant 0 : index
      %13 = vector.load %arg6[%c0_12, %c0_13] : memref<1x128xf32, #tpu.memory_space<vmem>>, vector<1x128xf32>
      %14 = vector.broadcast %13 : vector<1x128xf32> to vector<16x128xf32>
      %15 = arith.addf %12, %14 : vector<16x128xf32>
      %cst_14 = arith.constant 0.000000e+00 : f32
      %16 = vector.broadcast %cst_14 : f32 to vector<16x128xf32>
      %17 = arith.maximumf %15, %16 : vector<16x128xf32>
      %c0_15 = arith.constant 0 : index
      %c0_16 = arith.constant 0 : index
      %18 = vector.load %arg4[%c0_15, %c0_16] : memref<16x128xf32, #tpu.memory_space<vmem>>, vector<16x128xf32>
      %19 = arith.addf %18, %17 : vector<16x128xf32>
      %c0_17 = arith.constant 0 : index
      %c0_18 = arith.constant 0 : index
      %20 = vector.load %arg7[%c0_17, %c0_18] : memref<16x128xf32, #tpu.memory_space<vmem>>, vector<16x128xf32>
      tpu.vector_store %arg7[%c0_17, %c0_18], %19 {strides = array<i32>} : memref<16x128xf32, #tpu.memory_space<vmem>>, vector<16x128xf32>,
    } else {
    }
    return
  }
  func.func @transform_0(%arg0: i32, %arg1: i32, %arg2: i32) -> (i32, i32) {
    %c0_i32 = arith.constant 0 : i32
    return %arg0, %arg2 : i32, i32
  }
  func.func @transform_1(%arg0: i32, %arg1: i32, %arg2: i32) -> (i32, i32) {
    %c0_i32 = arith.constant 0 : i32
    return %arg0, %arg1 : i32, i32
  }
  func.func @transform_2(%arg0: i32, %arg1: i32, %arg2: i32) -> (i32, i32) {
    %c0_i32 = arith.constant 0 : i32
    return %arg2, %arg1 : i32, i32
  }
  func.func @transform_3(%arg0: i32, %arg1: i32, %arg2: i32) -> (i32, i32) {
    %c0_i32 = arith.constant 0 : i32
    %c0_i32_0 = arith.constant 0 : i32
    return %c0_i32, %arg1 : i32, i32
  }
  func.func @transform_4(%arg0: i32, %arg1: i32, %arg2: i32) -> (i32, i32) {
    %c0_i32 = arith.constant 0 : i32
    return %arg0, %arg1 : i32, i32
  }
}

</mosaic_0001>

<bundles_post_ra>
// kernel: residual_linear.1
= control target key start
LH: loop header
LB: loop body
LE: loop exit
PB: predicated region body
PF: predicated region fallthrough
CT: control target
= control target key end

     0   :  { %v219_v0 = vmov 0.0   ;;  %vm220_vm0 = vmmov 0   ;;  %s288_s2 = inlined_call_operand.vmem [shape: bf16[128,128], index: 2, kind: input, shape index: {}]   ;;  %s289_s0 = inlined_call_operand.vmem [shape: bf16[16,128], index: 0, kind: input, shape index: {}]   ;;  %s290_s3 = inlined_call_operand.vmem [shape: f32[1,128], index: 3, kind: input, shape index: {}]   ;;  %s291_s1 = inlined_call_operand.vmem [shape: f32[16,128], index: 1, kind: input, shape index: {}]   ;;  %s292_s4 = inlined_call_operand.vmem [shape: f32[16,128], index: 4, kind: output, shape index: {}]  }
   0x1   :  { %188 = vmatprep.subr.bf16.mxu0 %v219_v0  ;;  %v210_v1 = vld [vmem:[%s288_s2] sm:$0xff]   ;;  %204 = vmatprep.mubr.msk.bf16.mxu0 %vm220_vm0, %v219_v0  ;;  %v211_v2 = vld [vmem:[%s288_s2 + $0x8] sm:$0xff]   ;;  %v212_v3 = vld [vmem:[%s288_s2 + $0x10] sm:$0xff]  }
   0x2   :  { %189 = vmatpush3.bf16.msra.mxu0 %v210_v1  ;;  %v213_v4 = vld [vmem:[%s288_s2 + $0x18] sm:$0xff]   ;;  %v214_v5 = vld [vmem:[%s288_s2 + $0x20] sm:$0xff]   ;;  %v215_v6 = vld [vmem:[%s288_s2 + $0x28] sm:$0xff]  }
   0x3   :  { %190 = vmatprep.subr.bf16.mxu0 %v219_v0  ;;  %v216_v7 = vld [vmem:[%s288_s2 + $0x30] sm:$0xff]   ;;  %v217_v8 = vld [vmem:[%s288_s2 + $0x38] sm:$0xff]   ;;  %v218_v9 = vld [vmem:[%s289_s0] sm:$0xff]  }
   0x4   :  { %v178_v11 = vld [vmem:[%s290_s3] ss:$0 sm:$0xff]  ;;  %v160_v19 = vld [vmem:[%s291_s1 + $0x8] sm:$0xff] }
   0x5   :  { %v159_v16 = vld [vmem:[%s291_s1] sm:$0xff] }
   0x6   :  { %191 = vmatpush3.bf16.msra.mxu0 %v211_v2 }
   0x7   :  { %192 = vmatprep.subr.bf16.mxu0 %v219_v0 }
   0xa   :  { %193 = vmatpush3.bf16.msra.mxu0 %v212_v3 }
   0xb   :  { %194 = vmatprep.subr.bf16.mxu0 %v219_v0 }
   0xe   :  { %195 = vmatpush3.bf16.msra.mxu0 %v213_v4 }
   0xf   :  { %196 = vmatprep.subr.bf16.mxu0 %v219_v0 }
  0x12   :  { %197 = vmatpush3.bf16.msra.mxu0 %v214_v5 }
  0x13   :  { %198 = vmatprep.subr.bf16.mxu0 %v219_v0 }
  0x16   :  { %199 = vmatpush3.bf16.msra.mxu0 %v215_v6 }
  0x17   :  { %200 = vmatprep.subr.bf16.mxu0 %v219_v0 }
  0x1a   :  { %201 = vmatpush3.bf16.msra.mxu0 %v216_v7 }
  0x1b   :  { %202 = vmatprep.subr.bf16.mxu0 %v219_v0 }
  0x1e   :  { %203 = vmatpush3.bf16.msra.mxu0 %v217_v8 }
  0x21   :  { %205 = vmatmul.mubr.bf16.vlgmr.msra.gmra.mrb[0].mxu0 %v218_v9 }
  0xf4   :  { %v132_v10 = vpop.f32.mrb[0].mxu0 }
  0xf5   :  { %v206_v12 = vpop.f32.mrb[1].mxu0  ;;  %v155_v14 = vadd.f32 %v178_v11, %v132_v10 }
  0xf6   :  { %v135_v13 = vpop.f32.mrb[2].mxu0 }
  0xf7   :  { %v207_v15 = vpop.f32.mrb[3].mxu0  ;;  %v157_v17 = vmax.f32 %v155_v14, 0.0  ;;  %v156_v18 = vadd.f32 %v178_v11, %v135_v13 }
  0xf9   :  { %v161_v20 = vadd.f32 %v159_v16, %v157_v17  ;;  %v158_v21 = vmax.f32 %v156_v18, 0.0 }
  0xfb   :  { %163 = vst [vmem:[%s292_s4] sm:$0xff] %v161_v20  ;;  %v162_v22 = vadd.f32 %v160_v19, %v158_v21 }
  0xfd   :  { %164 = vst [vmem:[%s292_s4 + $0x8] sm:$0xff] %v162_v22 }

</bundles_post_ra>
